<compile_context>
chip_gen: v7x
topology: tpu7x:2x2x1
jax: 0.10.0
libtpu: 0.0.40
codegen_flags: <defaults>
</compile_context>

<pallas_src>
import jax
import jax.numpy as jnp
from jax.experimental import pallas as pl
from jax.experimental.pallas import tpu as pltpu


def _round_up(x: int, m: int) -> int:
    return ((x + m - 1) // m) * m


def _param_layer_kernel(c_ref, wt_ref, kd_ref, out_ref, acc_ref):
    # c_ref:  SMEM (1,) f32       -- folded constant  c = -0.5 / ls^2
    # wt_ref: VMEM (B_pad, tn)    -- weights tile (f32)
    # kd_ref: VMEM (tn, tp)       -- pre-transposed dists tile
    # out_ref: VMEM (B_pad, tp)   -- output tile (resident across the k axis)
    # acc_ref: VMEM (B_pad, tp)   -- f32 accumulator scratch
    kn = pl.program_id(1)  # reduction axis (last, "arbitrary")

    @pl.when(kn == 0)
    def _init():
        acc_ref[...] = jnp.zeros_like(acc_ref)

    # RBF kernel with folded constant: one VPU mul feeding the EUP exp.
    kern = jnp.exp(kd_ref[...] * c_ref[0])                 # (tn, tp) f32
    # (B_pad, tn) @ (tn, tp) on the MXU -- no in-kernel transpose needed.
    acc_ref[...] += jnp.dot(
        wt_ref[...], kern, preferred_element_type=jnp.float32
    )

    @pl.when(kn == pl.num_programs(1) - 1)
    def _store():
        out_ref[...] = acc_ref[...].astype(out_ref.dtype)


def param_layer_forward(wt, dists, init_ls, *, tn=512, tp=256,
                        exp_dtype=jnp.float32):
    """wt: (B, I, J), dists: (P, I, J), init_ls: scalar. Returns (B, P) f32.

    exp_dtype: storage dtype for the (dominant) dists operand. Keep f32 on
    v5e; bf16 is worthwhile on v6e/v7x (halves HBM bytes for dists).
    """
    B, I, J = wt.shape
    P = dists.shape[0]
    N = I * J

    # TPU-friendly padded shapes / tile sizes.
    B_pad = _round_up(max(B, 8), 8)              # sublane multiple (f32 LHS)
    tp = _round_up(min(tp, _round_up(P, 128)), 128)
    P_pad = _round_up(P, tp)                     # lane-dense output
    tn = _round_up(min(tn, _round_up(N, 128)), 128)
    N_pad = _round_up(N, tn)

    # wt -> (B_pad, N_pad), zero padded: padded rows/cols contribute 0.
    wt_flat = jnp.zeros((B_pad, N_pad), jnp.float32)
    wt_flat = wt_flat.at[:B, :N].set(wt.reshape(B, N).astype(jnp.float32))

    # dists -> pre-transposed (N_pad, P_pad) so the kernel matmul needs no .T.
    dists_t = jnp.zeros((N_pad, P_pad), exp_dtype)
    dists_t = dists_t.at[:N, :P].set(dists.reshape(P, N).T.astype(exp_dtype))

    # Fold the constant once: k = exp(c * d) with c = -0.5 / ls^2.
    ls = jnp.asarray(init_ls, dtype=jnp.float32).reshape(())
    c = (-0.5 / (ls * ls)).reshape(1)

    grid = (P_pad // tp, N_pad // tn)

    # Explicit VMEM budget from the (double-buffered) tiles, with headroom.
    elt = jnp.dtype(exp_dtype).itemsize
    vmem_needed = (2 * B_pad * tn * 4            # wt tiles (double buffered)
                   + 2 * tn * tp * elt           # dists^T tiles
                   + 2 * B_pad * tp * 4          # output tiles
                   + B_pad * tp * 4)             # accumulator scratch
    vmem_limit = int(min(max(4 * vmem_needed, 8 << 20), 32 << 20))

    n_ptiles = P_pad // tp
    cost = pl.CostEstimate(
        flops=2 * B_pad * P_pad * N_pad,
        transcendentals=P_pad * N_pad,
        bytes_accessed=(n_ptiles * B_pad * N_pad * 4   # wt re-streamed per P tile
                        + N_pad * P_pad * elt          # dists^T
                        + B_pad * P_pad * 4),          # output
    )

    out_padded = pl.pallas_call(
        _param_layer_kernel,
        out_shape=jax.ShapeDtypeStruct((B_pad, P_pad), jnp.float32),
        grid_spec=pltpu.PrefetchScalarGridSpec(
            num_scalar_prefetch=0,
            grid=grid,
            in_specs=[
                pl.BlockSpec(memory_space=pltpu.MemorySpace.SMEM),   # c scalar
                pl.BlockSpec((B_pad, tn), lambda j, k: (0, k)),      # wt tile
                pl.BlockSpec((tn, tp), lambda j, k: (k, j)),         # dists^T tile
            ],
            out_specs=pl.BlockSpec((B_pad, tp), lambda j, k: (0, j)),
            scratch_shapes=[pltpu.VMEM((B_pad, tp), jnp.float32)],
        ),
        compiler_params=pltpu.CompilerParams(
            dimension_semantics=("parallel", "arbitrary"),
            vmem_limit_bytes=vmem_limit,
        ),
        cost_estimate=cost,
    )(c, wt_flat, dists_t)

    return out_padded[:B, :P]


if __name__ == "__main__":
    key = jax.random.PRNGKey(0)
    k1, k2 = jax.random.split(key)

    B, P, I, J = 2, 4, 16, 16
    init_ls = 0.5  # deterministic "parameter" value (ParamLayer.__init__(init_ls))

    wt = jax.random.normal(k1, (B, I, J), dtype=jnp.float32)
    dists = jnp.abs(jax.random.normal(k2, (P, I, J), dtype=jnp.float32))

    out = param_layer_forward(wt, dists, init_ls)
    out = jax.block_until_ready(out)

    # Pure-JAX reference (same math as the PyTorch module).
    ref = jnp.einsum(
        "bij,pij->bp", wt, jnp.exp(-0.5 * dists / (init_ls ** 2))
    )
    assert out.shape == (B, P)
    assert jnp.allclose(out, ref, atol=1e-4, rtol=1e-4)

    print("KERNEL_OK")
</pallas_src>

<mosaic_0001>
module attributes {stable_mosaic.version = 11 : i64} {
  func.func @_param_layer_kernel(%arg0: i32, %arg1: i32, %arg2: memref<1xf32, #tpu.memory_space<smem>>, %arg3: memref<8x256xf32, #tpu.memory_space<vmem>>, %arg4: memref<256x128xf32, #tpu.memory_space<vmem>>, %arg5: memref<8x128xf32, #tpu.memory_space<vmem>>, %arg6: memref<8x128xf32, #tpu.memory_space<vmem>>) attributes {dimension_semantics = [#tpu.dimension_semantics<parallel>, #tpu.dimension_semantics<arbitrary>], iteration_bounds = array<i64: 1, 1>, scalar_prefetch = 0 : i64, scratch_operands = 1 : i64, tpu.core_type = #tpu.core_type<tc>, window_params = [{transform_indices = @transform_0, window_bounds = array<i64: 1>}, {transform_indices = @transform_1, window_bounds = array<i64: 8, 256>}, {transform_indices = @transform_2, window_bounds = array<i64: 256, 128>}, {transform_indices = @transform_3, window_bounds = array<i64: 8, 128>}]} {
    %c0_i32 = arith.constant 0 : i32
    %0 = arith.cmpi eq, %arg1, %c0_i32 : i32
    %1 = arith.extui %0 : i1 to i32
    %c0_i32_0 = arith.constant 0 : i32
    %2 = arith.cmpi ne, %1, %c0_i32_0 : i32
    scf.if %2 {
      %cst_11 = arith.constant 0.000000e+00 : f32
      %16 = vector.broadcast %cst_11 : f32 to vector<8x128xf32>
      %c0_12 = arith.constant 0 : index
      %c0_13 = arith.constant 0 : index
      %17 = vector.load %arg6[%c0_12, %c0_13] : memref<8x128xf32, #tpu.memory_space<vmem>>, vector<8x128xf32>
      tpu.vector_store %arg6[%c0_12, %c0_13], %16 {strides = array<i32>} : memref<8x128xf32, #tpu.memory_space<vmem>>, vector<8x128xf32>,
    } else {
    }
    %c0 = arith.constant 0 : index
    %c0_1 = arith.constant 0 : index
    %3 = vector.load %arg4[%c0, %c0_1] : memref<256x128xf32, #tpu.memory_space<vmem>>, vector<256x128xf32>
    %c0_2 = arith.constant 0 : index
    %4 = memref.load %arg2[%c0_2] : memref<1xf32, #tpu.memory_space<smem>>
    %5 = vector.broadcast %4 : f32 to vector<256x128xf32>
    %6 = arith.mulf %3, %5 : vector<256x128xf32>
    %7 = math.exp %6 : vector<256x128xf32>
    %c0_3 = arith.constant 0 : index
    %c0_4 = arith.constant 0 : index
    %8 = vector.load %arg6[%c0_3, %c0_4] : memref<8x128xf32, #tpu.memory_space<vmem>>, vector<8x128xf32>
    %c0_5 = arith.constant 0 : index
    %c0_6 = arith.constant 0 : index
    %9 = vector.load %arg3[%c0_5, %c0_6] : memref<8x256xf32, #tpu.memory_space<vmem>>, vector<8x256xf32>
    %cst = arith.constant dense<0.000000e+00> : vector<8x128xf32>
    %10 = tpu.matmul %9, %7, %cst {dimension_numbers = #tpu.dot_dimension_numbers<[1], [0], [0], [1], [0, 0, 1, 1], [], []>} : vector<8x256xf32>, vector<256x128xf32>, vector<8x128xf32> -> vector<8x128xf32>
    %11 = arith.addf %8, %10 : vector<8x128xf32>
    %c0_7 = arith.constant 0 : index
    %c0_8 = arith.constant 0 : index
    %12 = vector.load %arg6[%c0_7, %c0_8] : memref<8x128xf32, #tpu.memory_space<vmem>>, vector<8x128xf32>
    tpu.vector_store %arg6[%c0_7, %c0_8], %11 {strides = array<i32>} : memref<8x128xf32, #tpu.memory_space<vmem>>, vector<8x128xf32>,
    %c0_i32_9 = arith.constant 0 : i32
    %13 = arith.cmpi eq, %arg1, %c0_i32_9 : i32
    %14 = arith.extui %13 : i1 to i32
    %c0_i32_10 = arith.constant 0 : i32
    %15 = arith.cmpi ne, %14, %c0_i32_10 : i32
    scf.if %15 {
      %c0_11 = arith.constant 0 : index
      %c0_12 = arith.constant 0 : index
      %16 = vector.load %arg6[%c0_11, %c0_12] : memref<8x128xf32, #tpu.memory_space<vmem>>, vector<8x128xf32>
      %c0_13 = arith.constant 0 : index
      %c0_14 = arith.constant 0 : index
      %17 = vector.load %arg5[%c0_13, %c0_14] : memref<8x128xf32, #tpu.memory_space<vmem>>, vector<8x128xf32>
      tpu.vector_store %arg5[%c0_13, %c0_14], %16 {strides = array<i32>} : memref<8x128xf32, #tpu.memory_space<vmem>>, vector<8x128xf32>,
    } else {
    }
    return
  }
  func.func @transform_0(%arg0: i32, %arg1: i32) -> i32 {
    %c0_i32 = arith.constant 0 : i32
    %c0_i32_0 = arith.constant 0 : i32
    return %c0_i32 : i32
  }
  func.func @transform_1(%arg0: i32, %arg1: i32) -> (i32, i32) {
    %c0_i32 = arith.constant 0 : i32
    %c0_i32_0 = arith.constant 0 : i32
    return %c0_i32, %arg1 : i32, i32
  }
  func.func @transform_2(%arg0: i32, %arg1: i32) -> (i32, i32) {
    %c0_i32 = arith.constant 0 : i32
    return %arg1, %arg0 : i32, i32
  }
  func.func @transform_3(%arg0: i32, %arg1: i32) -> (i32, i32) {
    %c0_i32 = arith.constant 0 : i32
    %c0_i32_0 = arith.constant 0 : i32
    return %c0_i32, %arg0 : i32, i32
  }
}

</mosaic_0001>

<bundles_post_ra>
// kernel: tpu_custom_call.1
= control target key start
LH: loop header
LB: loop body
LE: loop exit
PB: predicated region body
PF: predicated region fallthrough
CT: control target
= control target key end

     0   :  { %9 = vsyncpa [#allocation5], 0  ;;  %s586_s0 = inlined_call_operand.<no memory space> [shape: f32[1], index: 0, kind: input, shape index: {}]   ;;  %s587_s1 = inlined_call_operand.hbm [shape: f32[8,256], index: 1, kind: input, shape index: {}]   ;;  %s588_s2 = inlined_call_operand.hbm [shape: f32[256,128], index: 2, kind: input, shape index: {}]   ;;  %s589_s3 = inlined_call_operand.hbm [shape: f32[8,128], index: 3, kind: output, shape index: {}]  }
   0x1   :  { %10 = vsyncpa [#allocation8], 0 }
   0x2   :  { %11 = vsyncpa [#allocation6], 0  ;;  %s481_s12 = smov [#allocation4]   ;;  %s482_s14 = smov [#allocation7]  }
   0x3   :  { %s20_s13 = sshll.u32 %s481_s12, 4  ;;  %s29_s15 = sshll.u32 %s482_s14, 4  ;;  %s21_s13 = int_to_ptr.vmem [resolvable:$true] %s20_s13  ;;  %s506_s15 = int_to_ptr.vmem [resolvable:$true] %s29_s15 }
   0x4   :  { %s409_s18 = scalar_lea.hbm %s587_s1, 256 }
   0x5   :  { %p410_p0 = scmp.ne.s32.totalorder %s587_s1, %s409_s18  ;;  %p413_p1 = scmp.lt.u32.totalorder %s409_s18, %s587_s1 }
   0x7   :  { %p415_p2 = pnand %p413_p1, %p410_p0 }
   0x9   :  { %418 = shalt.err (!%p415_p2)
}
   0xa   :  { %s419_s23 = scalar_lea.vmem %s21_s13, 256  ;;  %p424_p4 = scmp.lt.s32.totalorder %s21_s13, %s21_s13 }
   0xb   :  { %p420_p3 = scmp.ne.s32.totalorder %s21_s13, %s419_s23  ;;  %p425_p5 = scmp.lt.s32.totalorder %s419_s23, %s419_s23 }
   0xd   :  { %p426_p6 = por %p425_p5, %p424_p4 }
   0xf   :  { %p427_p7 = pnand %p426_p6, %p420_p3 }
  0x11   :  { %430 = shalt.err (!%p427_p7)
}
  0x12   :  { %23 = dma.hbm_to_vmem [thread:$0]  %s587_s1, 256, %s21_s13, [#allocation5]  }
  0x13   :  { %s431_s28 = scalar_lea.hbm %s588_s2, 4096 }
  0x14   :  { %p432_p8 = scmp.ne.s32.totalorder %s588_s2, %s431_s28  ;;  %p435_p9 = scmp.lt.u32.totalorder %s431_s28, %s588_s2 }
  0x16   :  { %p437_p10 = pnand %p435_p9, %p432_p8 }
  0x18   :  { %440 = shalt.err (!%p437_p10)
}
  0x19   :  { %s441_s6 = scalar_lea.vmem %s506_s15, 4096  ;;  %p446_p12 = scmp.lt.s32.totalorder %s506_s15, %s506_s15 }
  0x1a   :  { %p442_p11 = scmp.ne.s32.totalorder %s506_s15, %s441_s6  ;;  %p447_p13 = scmp.lt.s32.totalorder %s441_s6, %s441_s6 }
  0x1c   :  { %p448_p0 = por %p447_p13, %p446_p12 }
  0x1e   :  { %p449_p1 = pnand %p448_p0, %p442_p11 }
  0x20   :  { %452 = shalt.err (!%p449_p1)
}
  0x21   :  { %s483_s1 = smov 128   ;;  %s484_s7 = smov 8  }
  0x22   :  { %35 = dma.hbm_to_vmem [thread:$0]  %s588_s2, 4096, %s506_s15, [#allocation8], %s483_s1, %s483_s1, %s484_s7  }
  0x23   :  { %475 = dma.done.wait [#allocation5], 256  }
  0x24   :  { %476 = vsyncadd [#allocation5], 4294967040 }
  0x25   :  { %477 = dma.done.wait [#allocation8], 4096  }
  0x26   :  { %478 = vsyncadd [#allocation8], 4294963200  ;;  %v540_v0 = vstv %s586_s0  ;;  %v63_v1 = vld [vmem:[#allocation7 + $0x80] sm:$0xff]  ;;  %v64_v2 = vld [vmem:[#allocation7 + $0x88] sm:$0xff]  ;;  %s485_s0 = smov [#allocation9]  }
  0x27   :  { %v47_v3 = vld [vmem:[#allocation7] sm:$0xff]  ;;  %v97_v4 = vmul.f32 %v540_v0, %v63_v1  ;;  %v98_v5 = vmul.f32 %v540_v0, %v64_v2  ;;  %v48_v6 = vld [vmem:[#allocation7 + $0x8] sm:$0xff]  ;;  %v65_v8 = vld [vmem:[#allocation7 + $0x90] sm:$0xff]  ;;  %s263_s2 = sshll.u32 %s485_s0, 4  ;;  %s264_s2 = int_to_ptr.vmem [resolvable:$true] %s263_s2 }
  0x28   :  { %v81_v7 = vmul.f32 %v540_v0, %v47_v3  ;;  %v66_v9 = vld [vmem:[#allocation7 + $0x98] sm:$0xff]  ;;  %v82_v10 = vmul.f32 %v540_v0, %v48_v6  ;;  %v99_v11 = vmul.f32 %v540_v0, %v65_v8  ;;  %v49_v13 = vld [vmem:[#allocation7 + $0x10] sm:$0xff]  ;;  %v67_v15 = vld [vmem:[#allocation7 + $0xa0] sm:$0xff]  ;;  %s453_s12 = scalar_lea.vmem %s264_s2, 128  ;;  %p458_p3 = scmp.lt.s32.totalorder %s264_s2, %s264_s2 }
  0x29   :  { %v100_v12 = vmul.f32 %v540_v0, %v66_v9  ;;  %v50_v14 = vld [vmem:[#allocation7 + $0x18] sm:$0xff]  ;;  %v145_v16 = vmul.f32 1.442695, %v97_v4  ;;  %v147_v17 = vmul.f32 1.442695, %v98_v5  ;;  %v83_v19 = vmul.f32 %v540_v0, %v49_v13  ;;  %v68_v23 = vld [vmem:[#allocation7 + $0xa8] sm:$0xff]  ;;  %p454_p2 = scmp.ne.s32.totalorder %s264_s2, %s453_s12  ;;  %p459_p4 = scmp.lt.s32.totalorder %s453_s12, %s453_s12 }
  0x2a   :  { %v113_v18 = vmul.f32 1.442695, %v81_v7  ;;  %v115_v20 = vmul.f32 1.442695, %v82_v10  ;;  %v84_v21 = vmul.f32 %v540_v0, %v50_v14  ;;  %v149_v22 = vmul.f32 1.442695, %v99_v11 }
  0x2b   :  { %345 = vpow2.f32 %v145_v16  ;;  %v101_v24 = vmul.f32 %v540_v0, %v67_v15  ;;  %v51_v25 = vld [vmem:[#allocation7 + $0x20] sm:$0xff]  ;;  %v52_v26 = vld [vmem:[#allocation7 + $0x28] sm:$0xff]  ;;  %v151_v27 = vmul.f32 1.442695, %v100_v12  ;;  %v102_v28 = vmul.f32 %v540_v0, %v68_v23  ;;  %v69_v29 = vld [vmem:[#allocation7 + $0xb0] sm:$0xff]  ;;  %p460_p5 = por %p459_p4, %p458_p3 }
  0x2c   :  { %347 = vpow2.f32 %v147_v17  ;;  %v117_v30 = vmul.f32 1.442695, %v83_v19  ;;  %v85_v31 = vmul.f32 %v540_v0, %v51_v25  ;;  %v70_v32 = vld [vmem:[#allocation7 + $0xb8] sm:$0xff]  ;;  %v119_v33 = vmul.f32 1.442695, %v84_v21  ;;  %v53_v35 = vld [vmem:[#allocation7 + $0x30] sm:$0xff] }
  0x2d   :  { %349 = vpow2.f32 %v113_v18  ;;  %v86_v34 = vmul.f32 %v540_v0, %v52_v26  ;;  %v153_v36 = vmul.f32 1.442695, %v101_v24  ;;  %v103_v37 = vmul.f32 %v540_v0, %v69_v29  ;;  %v54_v38 = vld [vmem:[#allocation7 + $0x38] sm:$0xff]  ;;  %v71_v41 = vld [vmem:[#allocation7 + $0xc0] sm:$0xff]  ;;  %v72_v44 = vld [vmem:[#allocation7 + $0xc8] sm:$0xff]  ;;  %p461_p6 = pnand %p460_p5, %p454_p2 }
  0x2e   :  { %351 = vpow2.f32 %v115_v20  ;;  %v155_v39 = vmul.f32 1.442695, %v102_v28  ;;  %v104_v40 = vmul.f32 %v540_v0, %v70_v32  ;;  %v121_v42 = vmul.f32 1.442695, %v85_v31  ;;  %v55_v47 = vld [vmem:[#allocation7 + $0x40] sm:$0xff]  ;;  %v56_v50 = vld [vmem:[#allocation7 + $0x48] sm:$0xff] }
  0x2f   :  { %353 = vpow2.f32 %v149_v22  ;;  %v87_v43 = vmul.f32 %v540_v0, %v53_v35  ;;  %v123_v45 = vmul.f32 1.442695, %v86_v34  ;;  %v88_v46 = vmul.f32 %v540_v0, %v54_v38  ;;  %v73_v53 = vld [vmem:[#allocation7 + $0xd0] sm:$0xff]  ;;  %v179_v54 = vld [vmem:[#allocation4 + $0x8] sm:$0xff]  ;;  %v75_v8 = vld [vmem:[#allocation7 + $0xe0] sm:$0xff] }
  0x30   :  { %355 = vpow2.f32 %v151_v27  ;;  %v157_v48 = vmul.f32 1.442695, %v103_v37  ;;  %v105_v49 = vmul.f32 %v540_v0, %v71_v41  ;;  %v159_v51 = vmul.f32 1.442695, %v104_v40  ;;  %v74_v58 = vld [vmem:[#allocation7 + $0xd8] sm:$0xff]  ;;  %244 = vmatprep.mubr.f32.mxu0 %v179_v54  ;;  %v57_v62 = vld [vmem:[#allocation7 + $0x50] sm:$0xff] }
  0x31   :  { %357 = vpow2.f32 %v117_v30  ;;  %v106_v52 = vmul.f32 %v540_v0, %v72_v44  ;;  %v125_v56 = vmul.f32 1.442695, %v87_v43  ;;  %v89_v57 = vmul.f32 %v540_v0, %v55_v47  ;;  %v58_v4 = vld [vmem:[#allocation7 + $0x58] sm:$0xff]  ;;  %v76_v13 = vld [vmem:[#allocation7 + $0xe8] sm:$0xff]  ;;  %v59_v17 = vld [vmem:[#allocation7 + $0x60] sm:$0xff] }
  0x32   :  { %359 = vpow2.f32 %v119_v33  ;;  %v127_v60 = vmul.f32 1.442695, %v88_v46  ;;  %v90_v61 = vmul.f32 %v540_v0, %v56_v50  ;;  %v161_v2 = vmul.f32 1.442695, %v105_v49  ;;  %v60_v22 = vld [vmem:[#allocation7 + $0x68] sm:$0xff]  ;;  %v77_v26 = vld [vmem:[#allocation7 + $0xf0] sm:$0xff] }
  0x33   :  { %361 = vpow2.f32 %v153_v36  ;;  %v107_v3 = vmul.f32 %v540_v0, %v73_v53  ;;  %v163_v6 = vmul.f32 1.442695, %v106_v52  ;;  %v108_v7 = vmul.f32 %v540_v0, %v74_v58  ;;  %v78_v31 = vld [vmem:[#allocation7 + $0xf8] sm:$0xff]  ;;  %v61_v35 = vld [vmem:[#allocation7 + $0x70] sm:$0xff] }
  0x34   :  { %363 = vpow2.f32 %v155_v39  ;;  %v129_v11 = vmul.f32 1.442695, %v89_v57  ;;  %v91_v12 = vmul.f32 %v540_v0, %v57_v62  ;;  %v131_v15 = vmul.f32 1.442695, %v90_v61  ;;  %v62_v40 = vld [vmem:[#allocation7 + $0x78] sm:$0xff] }
  0x35   :  { %v346_v55 = vpop.eup %345  ;;  %365 = vpow2.f32 %v121_v42  ;;  %v92_v16 = vmul.f32 %v540_v0, %v58_v4  ;;  %v165_v20 = vmul.f32 1.442695, %v107_v3  ;;  %v109_v21 = vmul.f32 %v540_v0, %v75_v8 }
  0x36   :  { %v348_v59 = vpop.eup %347  ;;  %367 = vpow2.f32 %v123_v45  ;;  %v167_v24 = vmul.f32 1.442695, %v108_v7  ;;  %v110_v25 = vmul.f32 %v540_v0, %v76_v13  ;;  %v133_v29 = vmul.f32 1.442695, %v91_v12 }
  0x37   :  { %v350_v63 = vpop.eup %349  ;;  %v308_v1 = vpack.c.bf16 %v348_v59, %v346_v55  ;;  %369 = vpow2.f32 %v157_v48  ;;  %v93_v30 = vmul.f32 %v540_v0, %v59_v17  ;;  %v135_v33 = vmul.f32 1.442695, %v92_v16 }
  0x38   :  { %v352_v5 = vpop.eup %351  ;;  %371 = vpow2.f32 %v159_v51  ;;  %v94_v34 = vmul.f32 %v540_v0, %v60_v22  ;;  %v169_v38 = vmul.f32 1.442695, %v109_v21  ;;  %v111_v39 = vmul.f32 %v540_v0, %v77_v26 }
  0x39   :  { %v354_v9 = vpop.eup %353  ;;  %309 = vmatprep.subr.bf16.mxu0 %v308_v1  ;;  %v310_v10 = vpack.c.bf16 %v352_v5, %v350_v63  ;;  %373 = vpow2.f32 %v125_v56  ;;  %v171_v42 = vmul.f32 1.442695, %v110_v25  ;;  %v112_v43 = vmul.f32 %v540_v0, %v78_v31 }
  0x3a   :  { %v356_v14 = vpop.eup %355  ;;  %375 = vpow2.f32 %v127_v60  ;;  %v137_v46 = vmul.f32 1.442695, %v93_v30  ;;  %v95_v47 = vmul.f32 %v540_v0, %v61_v35  ;;  %v139_v49 = vmul.f32 1.442695, %v94_v34 }
  0x3b   :  { %v358_v18 = vpop.eup %357  ;;  %311 = vmatpush3.bf16.msra.mxu0 %v310_v10  ;;  %v312_v19 = vpack.c.bf16 %v356_v14, %v354_v9  ;;  %377 = vpow2.f32 %v161_v2  ;;  %v96_v50 = vmul.f32 %v540_v0, %v62_v40  ;;  %v173_v53 = vmul.f32 1.442695, %v111_v39 }
  0x3c   :  { %v360_v23 = vpop.eup %359  ;;  %379 = vpow2.f32 %v163_v6  ;;  %v175_v55 = vmul.f32 1.442695, %v112_v43  ;;  %v141_v58 = vmul.f32 1.442695, %v95_v47 }
  0x3d   :  { %v362_v27 = vpop.eup %361  ;;  %313 = vmatprep.subr.bf16.mxu0 %v312_v19  ;;  %v314_v28 = vpack.c.bf16 %v360_v23, %v358_v18  ;;  %381 = vpow2.f32 %v129_v11  ;;  %v143_v60 = vmul.f32 1.442695, %v96_v50  ;;  %v178_v19 = vld [vmem:[#allocation4] sm:$0xff] }
  0x3e   :  { %v364_v32 = vpop.eup %363  ;;  %383 = vpow2.f32 %v131_v15 }
  0x3f   :  { %v366_v36 = vpop.eup %365  ;;  %315 = vmatpush3.bf16.msra.mxu0 %v314_v28  ;;  %v316_v37 = vpack.c.bf16 %v364_v32, %v362_v27  ;;  %385 = vpow2.f32 %v165_v20 }
  0x40   :  { %v368_v41 = vpop.eup %367  ;;  %387 = vpow2.f32 %v167_v24 }
  0x41   :  { %v370_v44 = vpop.eup %369  ;;  %317 = vmatprep.subr.bf16.mxu0 %v316_v37  ;;  %v318_v45 = vpack.c.bf16 %v368_v41, %v366_v36  ;;  %389 = vpow2.f32 %v133_v29 }
  0x42   :  { %v372_v48 = vpop.eup %371  ;;  %391 = vpow2.f32 %v135_v33 }
  0x43   :  { %v374_v51 = vpop.eup %373  ;;  %319 = vmatpush3.bf16.msra.mxu0 %v318_v45  ;;  %v320_v52 = vpack.c.bf16 %v372_v48, %v370_v44  ;;  %393 = vpow2.f32 %v169_v38 }
  0x44   :  { %v376_v54 = vpop.eup %375  ;;  %395 = vpow2.f32 %v171_v42 }
  0x45   :  { %v378_v56 = vpop.eup %377  ;;  %321 = vmatprep.subr.bf16.mxu0 %v320_v52  ;;  %v322_v57 = vpack.c.bf16 %v376_v54, %v374_v51  ;;  %397 = vpow2.f32 %v137_v46 }
  0x46   :  { %v380_v59 = vpop.eup %379  ;;  %399 = vpow2.f32 %v139_v49 }
  0x47   :  { %v382_v61 = vpop.eup %381  ;;  %323 = vmatpush3.bf16.msra.mxu0 %v322_v57  ;;  %v324_v62 = vpack.c.bf16 %v380_v59, %v378_v56  ;;  %401 = vpow2.f32 %v173_v53 }
  0x48   :  { %v384_v0 = vpop.eup %383  ;;  %403 = vpow2.f32 %v175_v55 }
  0x49   :  { %v386_v63 = vpop.eup %385  ;;  %325 = vmatprep.subr.bf16.mxu0 %v324_v62  ;;  %v326_v1 = vpack.c.bf16 %v384_v0, %v382_v61  ;;  %405 = vpow2.f32 %v141_v58 }
  0x4a   :  { %v388_v2 = vpop.eup %387  ;;  %407 = vpow2.f32 %v143_v60 }
  0x4b   :  { %v390_v3 = vpop.eup %389  ;;  %327 = vmatpush3.bf16.msra.mxu0 %v326_v1  ;;  %v328_v4 = vpack.c.bf16 %v388_v2, %v386_v63 }
  0x4c   :  { %v392_v5 = vpop.eup %391 }
  0x4d   :  { %v394_v6 = vpop.eup %393  ;;  %329 = vmatprep.subr.bf16.mxu0 %v328_v4  ;;  %v330_v7 = vpack.c.bf16 %v392_v5, %v390_v3 }
  0x4e   :  { %v396_v8 = vpop.eup %395 }
  0x4f   :  { %v398_v9 = vpop.eup %397  ;;  %331 = vmatpush3.bf16.msra.mxu0 %v330_v7  ;;  %v332_v10 = vpack.c.bf16 %v396_v8, %v394_v6 }
  0x50   :  { %v400_v11 = vpop.eup %399 }
  0x51   :  { %v402_v12 = vpop.eup %401  ;;  %333 = vmatprep.subr.bf16.mxu0 %v332_v10  ;;  %v334_v13 = vpack.c.bf16 %v400_v11, %v398_v9 }
  0x52   :  { %v404_v14 = vpop.eup %403 }
  0x53   :  { %v406_v15 = vpop.eup %405  ;;  %335 = vmatpush3.bf16.msra.mxu0 %v334_v13  ;;  %v336_v16 = vpack.c.bf16 %v404_v14, %v402_v12 }
  0x54   :  { %v408_v17 = vpop.eup %407 }
  0x55   :  { %337 = vmatprep.subr.bf16.mxu0 %v336_v16  ;;  %v338_v18 = vpack.c.bf16 %v408_v17, %v406_v15 }
  0x57   :  { %339 = vmatpush3.bf16.msra.mxu0 %v338_v18 }
  0x5a   :  { %245 = vmatmul.mubr.f32.vlgmr.msra.gmra.mrb[0].mxu0 %v178_v19 }
 0x12d   :  { %v305_v20 = vpop.f32.mrb[0].mxu0 }
 0x12e   :  { %v306_v21 = vpop.f32.mrb[1].mxu0 }
 0x12f   :  { %v307_v22 = vadd.f32 %v306_v21, %v305_v20 }
 0x131   :  { %256 = vst [vmem:[#allocation9] sm:$0xff] %v307_v22 }
 0x132   :  { %464 = shalt.err (!%p461_p6)
}
 0x133   :  { %s465_s15 = scalar_lea.hbm %s589_s3, 128 }
 0x134   :  { %p466_p7 = scmp.ne.s32.totalorder %s589_s3, %s465_s15  ;;  %p469_p8 = scmp.lt.u32.totalorder %s465_s15, %s589_s3 }
 0x136   :  { %p471_p9 = pnand %p469_p8, %p466_p7 }
 0x138   :  { %474 = shalt.err (!%p471_p9)
}
 0x139   :  { %266 = dma.vmem_to_hbm [thread:$0]  %s264_s2, 128, %s589_s3, [#allocation6]  }
 0x13a   :  { %479 = dma.done.wait [#allocation6], 128  }
 0x13b   :  { %480 = vsyncadd [#allocation6], 4294967168 }
 0x13c   :  { %270 = vsyncpa [#allocation5], 1 }
 0x13d   :  { %271 = vsyncpa [#allocation8], 1 }
 0x13e   :  { %272 = vsyncpa [#allocation6], 1 }

</bundles_post_ra>
